<compile_context>
chip_gen: v5e
topology: v5e:2x2
jax: 0.10.0
libtpu: 0.0.40
codegen_flags: <defaults>
</compile_context>

<pallas_src>
import functools

import jax
import jax.numpy as jnp
from jax import lax
from jax.experimental import pallas as pl
from jax.experimental.pallas import tpu as pltpu

HALO = 4          # max(kernel_size // 2) over branches (k=9 -> pad 4)
_NEG = -1e30      # stands in for -inf in the max-pool boundary mask


def _leaky(v):
    return jnp.where(v > 0, v, 0.3 * v)


def _rup(n, m):
    return ((n + m - 1) // m) * m


def _inception_kernel(x_ref, w1x1_ref, w4_ref, *rest,
                      seq_len, lt, cout_p, fuse_tail):
    """One (batch, L-tile) grid step.  NCL: channels on sublanes, L on lanes.

    x_ref:    (Cin_p, lt + 2*HALO)  -- channel row `Cin` is the constant-1 bias row
    w1x1_ref: (3*Cout_p, Cin_p)     -- stacked [w1; w2a; w3a], bias folded in
    w4_ref:   (Cout_p, Cin_p)       -- bias folded in
    rest: (w23, b23, o) if fuse_tail else (w2b, b2b, w3b, b3b, o)
    """
    o_ref = rest[-1]
    f32 = jnp.float32
    cdt = w1x1_ref.dtype                     # matmul operand dtype (bf16 or f32)
    x = x_ref[...]                           # (Cin_p, win)
    win = x.shape[1]

    # Global column positions of this halo window.  Columns outside [0, seq_len)
    # are wrapper zero-padding and must act as conv zero-padding (branches 2/3)
    # or -inf padding (max-pool branch).
    j = pl.program_id(1)
    gpos = j * lt - HALO + lax.broadcasted_iota(jnp.int32, (1, win), 1)
    valid = (gpos >= 0) & (gpos < seq_len)   # (1, win)

    # ---- fused 1x1 convs for branches 1 / 2a / 3a (one MXU push, one LeakyReLU)
    h_act = _leaky(jnp.dot(w1x1_ref[...], x, preferred_element_type=f32))
    h1 = h_act[0:cout_p, HALO:HALO + lt]                       # branch 1 output
    # zero outside the real sequence so the k=5/k=9 convs see torch zero padding
    h23a = jnp.where(valid, h_act[cout_p:3 * cout_p, :], 0.0).astype(cdt)
    h2a = h23a[0:cout_p]
    h3a = h23a[cout_p:2 * cout_p]

    # im2col: k shifted lane slices stacked along the channel (sublane) axis
    col2 = [h2a[:, HALO - 2 + t:HALO - 2 + t + lt] for t in range(5)]
    col3 = [h3a[:, HALO - 4 + t:HALO - 4 + t + lt] for t in range(9)]

    if fuse_tail:
        # small Cout_p: one block-diagonal matmul (K = 14*Cout_p) for both tails
        w23_ref, b23_ref = rest[0], rest[1]
        col = jnp.concatenate(col2 + col3, axis=0)             # (14*Cout_p, lt)
        h23 = _leaky(jnp.dot(w23_ref[...], col,
                             preferred_element_type=f32) + b23_ref[...])
        h2 = h23[0:cout_p]
        h3 = h23[cout_p:2 * cout_p]
    else:
        w2b_ref, b2b_ref, w3b_ref, b3b_ref = rest[0], rest[1], rest[2], rest[3]
        h2 = _leaky(jnp.dot(w2b_ref[...], jnp.concatenate(col2, axis=0),
                            preferred_element_type=f32) + b2b_ref[...])
        h3 = _leaky(jnp.dot(w3b_ref[...], jnp.concatenate(col3, axis=0),
                            preferred_element_type=f32) + b3b_ref[...])

    # ---- branch 4: MaxPool1d(3, stride=1, padding=1) then 1x1 conv (no act.)
    # The constant-1 bias row passes through the max-pool unchanged for every
    # valid center column, so w4's folded bias column stays correct.
    xmp = jnp.where(valid, x.astype(f32), jnp.float32(_NEG))
    xm = jnp.maximum(jnp.maximum(xmp[:, HALO - 1:HALO - 1 + lt],
                                 xmp[:, HALO:HALO + lt]),
                     xmp[:, HALO + 1:HALO + 1 + lt]).astype(cdt)
    h4 = jnp.dot(w4_ref[...], xm, preferred_element_type=f32)

    # ---- direct lane-dense, sublane-aligned stores (torch.cat order [x1..x4])
    odt = o_ref.dtype
    o_ref[0 * cout_p:1 * cout_p, :] = h1.astype(odt)
    o_ref[1 * cout_p:2 * cout_p, :] = h2.astype(odt)
    o_ref[2 * cout_p:3 * cout_p, :] = h3.astype(odt)
    o_ref[3 * cout_p:4 * cout_p, :] = h4.astype(odt)


def inception_blk_pallas(x_ncl, params, *, lt_target=1024,
                         matmul_dtype=jnp.bfloat16, out_dtype=None):
    """x_ncl: (B, Cin, L) like PyTorch.  params: PyTorch-layout Conv1d weights
    (out, in, k) and biases (out,).  Returns (B, 4*outch, L) in NCL."""
    B, Cin, L = x_ncl.shape
    Cout = params["w1"].shape[0]
    out_dtype = x_ncl.dtype if out_dtype is None else out_dtype

    Cin_b = Cin + 1                          # +1 constant-1 row for folded biases
    Cin_p = _rup(Cin_b, 8)
    Cout_p = _rup(Cout, 8)
    fuse_tail = Cout_p <= 16                 # fuse k=5/k=9 matmuls when tiny

    # L tiling: lane axis carries L, so the tile is a multiple of 128.  Default
    # ~1024 fits comfortably in scoped VMEM on v5e/v6e/v7x; raise on v6e only
    # if profiling says so.
    lt = max(128, min(_rup(lt_target, 128), _rup(L, 128)))
    Lp = _rup(L, lt)
    n_l = Lp // lt
    # v7x has 2 TensorCores sharing the parallel grid: prefer an even step count.
    if (B * n_l) % 2 == 1 and lt > 128:
        lt_half = max(128, (lt // 2 // 128) * 128)
        n_l_half = _rup(L, lt_half) // lt_half
        if (B * n_l_half) % 2 == 0:
            lt, Lp, n_l = lt_half, _rup(L, lt_half), n_l_half
    win = lt + 2 * HALO

    # ---- parameter repacking: PyTorch layout -> padded kernel layout ----
    def conv1x1_w(w, b):                     # (out,in,1)+(out,) -> (Cout_p,Cin_p)
        m = jnp.zeros((Cout_p, Cin_p), jnp.float32)
        m = m.at[:Cout, :Cin].set(w[:, :, 0])
        m = m.at[:Cout, Cin].set(b)          # bias column hits the constant-1 row
        return m

    w1x1 = jnp.concatenate([conv1x1_w(params["w1"], params["b1"]),
                            conv1x1_w(params["w2a"], params["b2a"]),
                            conv1x1_w(params["w3a"], params["b3a"])],
                           axis=0).astype(matmul_dtype)        # (3*Cout_p, Cin_p)
    w4 = conv1x1_w(params["w4"], params["b4"]).astype(matmul_dtype)

    def convk_w(w):                          # (out, out, k) -> (Cout_p, k*Cout_p)
        k = w.shape[2]
        wp = jnp.pad(w, ((0, Cout_p - Cout), (0, Cout_p - Cout), (0, 0)))
        return jnp.transpose(wp, (0, 2, 1)).reshape(Cout_p, k * Cout_p)

    def bias(b):                             # (out,) -> (Cout_p, 1), f32
        return jnp.pad(b, (0, Cout_p - Cout)).astype(jnp.float32)[:, None]

    w2b = convk_w(params["w2b"])
    w3b = convk_w(params["w3b"])
    full = lambda shape: pl.BlockSpec(shape, lambda b, j: (0, 0))
    if fuse_tail:
        w23 = jnp.zeros((2 * Cout_p, 14 * Cout_p), jnp.float32)
        w23 = w23.at[:Cout_p, :5 * Cout_p].set(w2b)
        w23 = w23.at[Cout_p:, 5 * Cout_p:].set(w3b)
        tail_args = (w23.astype(matmul_dtype),
                     jnp.concatenate([bias(params["b2b"]), bias(params["b3b"])],
                                     axis=0))
        tail_specs = [full((2 * Cout_p, 14 * Cout_p)), full((2 * Cout_p, 1))]
    else:
        tail_args = (w2b.astype(matmul_dtype), bias(params["b2b"]),
                     w3b.astype(matmul_dtype), bias(params["b3b"]))
        tail_specs = [full((Cout_p, 5 * Cout_p)), full((Cout_p, 1)),
                      full((Cout_p, 9 * Cout_p)), full((Cout_p, 1))]

    # ---- input: append constant-1 bias row, pad channels/length, halo tiles ----
    ones_row = jnp.ones((B, 1, L), x_ncl.dtype)
    x_aug = jnp.concatenate([x_ncl, ones_row], axis=1)         # (B, Cin+1, L)
    x_pad = jnp.pad(x_aug.astype(jnp.float32),
                    ((0, 0), (0, Cin_p - Cin_b), (HALO, (Lp - L) + HALO)))
    x_pad = x_pad.astype(matmul_dtype)                         # (B, Cin_p, Lp+2*HALO)
    # TODO(synk): for wide Cin, replace this overlapping-window stack (one extra
    # HBM round trip of x) with a non-overlapping BlockSpec + in-kernel halo DMA.
    x_tiles = jnp.stack(
        [x_pad[:, :, j * lt:j * lt + win] for j in range(n_l)],
        axis=1)                                                # (B, n_l, Cin_p, win)

    in_specs = ([pl.BlockSpec((None, None, Cin_p, win), lambda b, j: (b, j, 0, 0)),
                 full((3 * Cout_p, Cin_p)),
                 full((Cout_p, Cin_p))]
                + tail_specs)
    out_spec = pl.BlockSpec((None, 4 * Cout_p, lt), lambda b, j: (b, 0, j))

    # per-step working set (double-buffered blocks + intermediates), with slack
    itm = jnp.dtype(matmul_dtype).itemsize
    ito = jnp.dtype(out_dtype).itemsize
    step_bytes = (2 * Cin_p * win * itm
                  + 2 * 4 * Cout_p * lt * ito
                  + 2 * (4 * Cout_p * Cin_p + 2 * Cout_p * 14 * Cout_p
                         + 4 * Cout_p) * itm
                  + (3 * Cout_p * win + 16 * Cout_p * lt + 2 * Cin_p * win) * 4)
    vmem_limit = int(min(48 * 2**20, max(32 * 2**20, 2 * step_bytes)))

    kernel = functools.partial(_inception_kernel, seq_len=L, lt=lt,
                               cout_p=Cout_p, fuse_tail=fuse_tail)
    out_full = pl.pallas_call(
        kernel,
        out_shape=jax.ShapeDtypeStruct((B, 4 * Cout_p, Lp), out_dtype),
        grid=(B, n_l),
        in_specs=in_specs,
        out_specs=out_spec,
        compiler_params=pltpu.CompilerParams(
            dimension_semantics=("parallel", "parallel"),
            vmem_limit_bytes=vmem_limit),
    )(x_tiles, w1x1, w4, *tail_args)

    # No post-kernel copies when shapes are aligned (L % lt == 0, Cout % 8 == 0).
    out = out_full if Lp == L else out_full[:, :, :L]
    if Cout_p != Cout:
        # TODO(synk): strip channel padding via per-branch out-BlockSpec rows
        # instead of this post-kernel reshape copy when Cout % 8 != 0.
        out = out.reshape(B, 4, Cout_p, L)[:, :, :Cout, :].reshape(B, 4 * Cout, L)
    return out


# ---------------- pure-JAX reference (PyTorch semantics, f32, NCL) ----------------
def inception_blk_ref(x, p):
    B, Cin, L = x.shape
    x = x.astype(jnp.float32)

    def conv1d(h, w, b, pad):
        # h (B, I, L), w (O, I, k), b (O,)  -- PyTorch Conv1d (cross-correlation)
        k = w.shape[2]
        hp = jnp.pad(h, ((0, 0), (0, 0), (pad, pad)))
        out = jnp.zeros((h.shape[0], w.shape[0], L), jnp.float32) + b[None, :, None]
        for t in range(k):
            out = out + jnp.einsum("bil,oi->bol", hp[:, :, t:t + L], w[:, :, t])
        return out

    h1 = _leaky(conv1d(x, p["w1"], p["b1"], 0))
    h2 = _leaky(conv1d(_leaky(conv1d(x, p["w2a"], p["b2a"], 0)),
                       p["w2b"], p["b2b"], 2))
    h3 = _leaky(conv1d(_leaky(conv1d(x, p["w3a"], p["b3a"], 0)),
                       p["w3b"], p["b3b"], 4))
    xp = jnp.pad(x, ((0, 0), (0, 0), (1, 1)), constant_values=-jnp.inf)
    xm = jnp.maximum(jnp.maximum(xp[:, :, 0:L], xp[:, :, 1:L + 1]), xp[:, :, 2:L + 2])
    h4 = conv1d(xm, p["w4"], p["b4"], 0)
    return jnp.concatenate([h1, h2, h3, h4], axis=1)


def make_params(key, inch, outch):
    """PyTorch-layout parameters: Conv1d weight (out, in, k), bias (out,)."""
    ks = jax.random.split(key, 12)
    s = 0.1
    return {
        "w1":  s * jax.random.normal(ks[0], (outch, inch, 1), jnp.float32),
        "b1":  s * jax.random.normal(ks[1], (outch,), jnp.float32),
        "w2a": s * jax.random.normal(ks[2], (outch, inch, 1), jnp.float32),
        "b2a": s * jax.random.normal(ks[3], (outch,), jnp.float32),
        "w2b": s * jax.random.normal(ks[4], (outch, outch, 5), jnp.float32),
        "b2b": s * jax.random.normal(ks[5], (outch,), jnp.float32),
        "w3a": s * jax.random.normal(ks[6], (outch, inch, 1), jnp.float32),
        "b3a": s * jax.random.normal(ks[7], (outch,), jnp.float32),
        "w3b": s * jax.random.normal(ks[8], (outch, outch, 9), jnp.float32),
        "b3b": s * jax.random.normal(ks[9], (outch,), jnp.float32),
        "w4":  s * jax.random.normal(ks[10], (outch, inch, 1), jnp.float32),
        "b4":  s * jax.random.normal(ks[11], (outch,), jnp.float32),
    }


if __name__ == "__main__":
    key = jax.random.PRNGKey(0)
    k_x, k_p = jax.random.split(key)

    B, inch, outch, L = 2, 4, 8, 16
    x = jax.random.normal(k_x, (B, inch, L), jnp.float32)      # NCL, like PyTorch
    params = make_params(k_p, inch, outch)

    ref = jax.block_until_ready(inception_blk_ref(x, params))

    # exact check with f32 matmul operands
    out_f32 = jax.block_until_ready(
        inception_blk_pallas(x, params, matmul_dtype=jnp.float32))
    assert out_f32.shape == (B, 4 * outch, L), out_f32.shape
    assert jnp.allclose(out_f32, ref, atol=1e-4, rtol=1e-4), float(
        jnp.max(jnp.abs(out_f32 - ref)))

    # default bf16-operand path (f32 accumulation, f32 output)
    out_bf16 = jax.block_until_ready(inception_blk_pallas(x, params))
    assert out_bf16.shape == (B, 4 * outch, L), out_bf16.shape
    assert jnp.allclose(out_bf16, ref, atol=3e-2, rtol=3e-2), float(
        jnp.max(jnp.abs(out_bf16 - ref)))

    # bf16 output path (halves output HBM traffic in the mem-bound regime)
    out_lo = jax.block_until_ready(
        inception_blk_pallas(x, params, out_dtype=jnp.bfloat16))
    assert out_lo.dtype == jnp.bfloat16 and out_lo.shape == (B, 4 * outch, L)
    assert jnp.allclose(out_lo.astype(jnp.float32), ref, atol=5e-2, rtol=5e-2), float(
        jnp.max(jnp.abs(out_lo.astype(jnp.float32) - ref)))

    print("KERNEL_OK")
</pallas_src>

<mosaic_0001>
module attributes {stable_mosaic.version = 11 : i64} {
  func.func @_inception_kernel(%arg0: i32, %arg1: i32, %arg2: memref<1x1x8x136xf32, #tpu.memory_space<vmem>>, %arg3: memref<24x8xf32, #tpu.memory_space<vmem>>, %arg4: memref<8x8xf32, #tpu.memory_space<vmem>>, %arg5: memref<16x112xf32, #tpu.memory_space<vmem>>, %arg6: memref<16x1xf32, #tpu.memory_space<vmem>>, %arg7: memref<1x32x128xf32, #tpu.memory_space<vmem>>) attributes {dimension_semantics = [#tpu.dimension_semantics<parallel>, #tpu.dimension_semantics<parallel>], iteration_bounds = array<i64: 2, 1>, scalar_prefetch = 0 : i64, scratch_operands = 0 : i64, tpu.core_type = #tpu.core_type<tc>, window_params = [{transform_indices = @transform_0, window_bounds = array<i64: 1, 1, 8, 136>}, {pipeline_mode = #tpu.pipeline_mode<synchronous>, transform_indices = @transform_1, window_bounds = array<i64: 24, 8>}, {pipeline_mode = #tpu.pipeline_mode<synchronous>, transform_indices = @transform_2, window_bounds = array<i64: 8, 8>}, {pipeline_mode = #tpu.pipeline_mode<synchronous>, transform_indices = @transform_3, window_bounds = array<i64: 16, 112>}, {pipeline_mode = #tpu.pipeline_mode<synchronous>, transform_indices = @transform_4, window_bounds = array<i64: 16, 1>}, {transform_indices = @transform_5, window_bounds = array<i64: 1, 32, 128>}]} {
    %c0 = arith.constant 0 : index
    %c0_0 = arith.constant 0 : index
    %c0_1 = arith.constant 0 : index
    %c0_2 = arith.constant 0 : index
    %0 = vector.load %arg2[%c0, %c0_0, %c0_1, %c0_2] : memref<1x1x8x136xf32, #tpu.memory_space<vmem>>, vector<1x1x8x136xf32>
    %1 = vector.shape_cast %0 : vector<1x1x8x136xf32> to vector<8x136xf32>
    %c128_i32 = arith.constant 128 : i32
    %2 = arith.muli %arg1, %c128_i32 : i32
    %c4_i32 = arith.constant 4 : i32
    %3 = arith.subi %2, %c4_i32 : i32
    %4 = tpu.iota {dimensions = array<i32: 1>} : vector<1x136xi32>
    %5 = vector.broadcast %3 : i32 to vector<1x136xi32>
    %6 = arith.addi %5, %4 : vector<1x136xi32>
    %c0_i32 = arith.constant 0 : i32
    %7 = vector.broadcast %c0_i32 : i32 to vector<1x136xi32>
    %8 = arith.cmpi sge, %6, %7 : vector<1x136xi32>
    %c16_i32 = arith.constant 16 : i32
    %9 = vector.broadcast %c16_i32 : i32 to vector<1x136xi32>
    %10 = arith.cmpi slt, %6, %9 : vector<1x136xi32>
    %11 = arith.andi %8, %10 : vector<1x136xi1>
    %c0_3 = arith.constant 0 : index
    %c0_4 = arith.constant 0 : index
    %12 = vector.load %arg3[%c0_3, %c0_4] : memref<24x8xf32, #tpu.memory_space<vmem>>, vector<24x8xf32>
    %cst = arith.constant dense<0.000000e+00> : vector<24x136xf32>
    %13 = tpu.matmul %12, %1, %cst {dimension_numbers = #tpu.dot_dimension_numbers<[1], [0], [0], [1], [0, 0, 1, 1], [], []>} : vector<24x8xf32>, vector<8x136xf32>, vector<24x136xf32> -> vector<24x136xf32>
    %cst_5 = arith.constant 0.000000e+00 : f32
    %14 = vector.broadcast %cst_5 : f32 to vector<24x136xf32>
    %15 = arith.cmpf ogt, %13, %14 : vector<24x136xf32>
    %cst_6 = arith.constant 3.000000e-01 : f32
    %16 = vector.broadcast %cst_6 : f32 to vector<24x136xf32>
    %17 = arith.mulf %16, %13 : vector<24x136xf32>
    %18 = arith.select %15, %13, %17 : vector<24x136xi1>, vector<24x136xf32>
    %19 = vector.extract_strided_slice %18 {offsets = [0, 4], sizes = [8, 128], strides = [1, 1]} : vector<24x136xf32> to vector<8x128xf32>
    %20 = vector.extract_strided_slice %18 {offsets = [8, 0], sizes = [16, 136], strides = [1, 1]} : vector<24x136xf32> to vector<16x136xf32>
    %cst_7 = arith.constant 0.000000e+00 : f32
    %21 = vector.shape_cast %11 : vector<1x136xi1> to vector<1x136xi1>
    %22 = vector.broadcast %21 : vector<1x136xi1> to vector<16x136xi1>
    %23 = vector.broadcast %cst_7 : f32 to vector<16x136xf32>
    %24 = arith.select %22, %20, %23 : vector<16x136xi1>, vector<16x136xf32>
    %25 = vector.extract_strided_slice %24 {offsets = [0, 0], sizes = [8, 136], strides = [1, 1]} : vector<16x136xf32> to vector<8x136xf32>
    %26 = vector.extract_strided_slice %24 {offsets = [8, 0], sizes = [8, 136], strides = [1, 1]} : vector<16x136xf32> to vector<8x136xf32>
    %27 = vector.extract_strided_slice %25 {offsets = [0, 2], sizes = [8, 128], strides = [1, 1]} : vector<8x136xf32> to vector<8x128xf32>
    %28 = vector.extract_strided_slice %25 {offsets = [0, 3], sizes = [8, 128], strides = [1, 1]} : vector<8x136xf32> to vector<8x128xf32>
    %29 = vector.extract_strided_slice %25 {offsets = [0, 4], sizes = [8, 128], strides = [1, 1]} : vector<8x136xf32> to vector<8x128xf32>
    %30 = vector.extract_strided_slice %25 {offsets = [0, 5], sizes = [8, 128], strides = [1, 1]} : vector<8x136xf32> to vector<8x128xf32>
    %31 = vector.extract_strided_slice %25 {offsets = [0, 6], sizes = [8, 128], strides = [1, 1]} : vector<8x136xf32> to vector<8x128xf32>
    %32 = vector.extract_strided_slice %26 {offsets = [0, 0], sizes = [8, 128], strides = [1, 1]} : vector<8x136xf32> to vector<8x128xf32>
    %33 = vector.extract_strided_slice %26 {offsets = [0, 1], sizes = [8, 128], strides = [1, 1]} : vector<8x136xf32> to vector<8x128xf32>
    %34 = vector.extract_strided_slice %26 {offsets = [0, 2], sizes = [8, 128], strides = [1, 1]} : vector<8x136xf32> to vector<8x128xf32>
    %35 = vector.extract_strided_slice %26 {offsets = [0, 3], sizes = [8, 128], strides = [1, 1]} : vector<8x136xf32> to vector<8x128xf32>
    %36 = vector.extract_strided_slice %26 {offsets = [0, 4], sizes = [8, 128], strides = [1, 1]} : vector<8x136xf32> to vector<8x128xf32>
    %37 = vector.extract_strided_slice %26 {offsets = [0, 5], sizes = [8, 128], strides = [1, 1]} : vector<8x136xf32> to vector<8x128xf32>
    %38 = vector.extract_strided_slice %26 {offsets = [0, 6], sizes = [8, 128], strides = [1, 1]} : vector<8x136xf32> to vector<8x128xf32>
    %39 = vector.extract_strided_slice %26 {offsets = [0, 7], sizes = [8, 128], strides = [1, 1]} : vector<8x136xf32> to vector<8x128xf32>
    %40 = vector.extract_strided_slice %26 {offsets = [0, 8], sizes = [8, 128], strides = [1, 1]} : vector<8x136xf32> to vector<8x128xf32>
    %41 = tpu.concatenate %27, %28, %29, %30, %31, %32, %33, %34, %35, %36, %37, %38, %39, %40 in 0 : vector<8x128xf32>, vector<8x128xf32>, vector<8x128xf32>, vector<8x128xf32>, vector<8x128xf32>, vector<8x128xf32>, vector<8x128xf32>, vector<8x128xf32>, vector<8x128xf32>, vector<8x128xf32>, vector<8x128xf32>, vector<8x128xf32>, vector<8x128xf32>, vector<8x128xf32> -> vector<112x128xf32>
    %c0_8 = arith.constant 0 : index
    %c0_9 = arith.constant 0 : index
    %42 = vector.load %arg5[%c0_8, %c0_9] : memref<16x112xf32, #tpu.memory_space<vmem>>, vector<16x112xf32>
    %cst_10 = arith.constant dense<0.000000e+00> : vector<16x128xf32>
    %43 = tpu.matmul %42, %41, %cst_10 {dimension_numbers = #tpu.dot_dimension_numbers<[1], [0], [0], [1], [0, 0, 1, 1], [], []>} : vector<16x112xf32>, vector<112x128xf32>, vector<16x128xf32> -> vector<16x128xf32>
    %c0_11 = arith.constant 0 : index
    %c0_12 = arith.constant 0 : index
    %44 = vector.load %arg6[%c0_11, %c0_12] : memref<16x1xf32, #tpu.memory_space<vmem>>, vector<16x1xf32>
    %45 = vector.broadcast %44 : vector<16x1xf32> to vector<16x128xf32>
    %46 = arith.addf %43, %45 : vector<16x128xf32>
    %cst_13 = arith.constant 0.000000e+00 : f32
    %47 = vector.broadcast %cst_13 : f32 to vector<16x128xf32>
    %48 = arith.cmpf ogt, %46, %47 : vector<16x128xf32>
    %cst_14 = arith.constant 3.000000e-01 : f32
    %49 = vector.broadcast %cst_14 : f32 to vector<16x128xf32>
    %50 = arith.mulf %49, %46 : vector<16x128xf32>
    %51 = arith.select %48, %46, %50 : vector<16x128xi1>, vector<16x128xf32>
    %52 = vector.extract_strided_slice %51 {offsets = [0, 0], sizes = [8, 128], strides = [1, 1]} : vector<16x128xf32> to vector<8x128xf32>
    %53 = vector.extract_strided_slice %51 {offsets = [8, 0], sizes = [8, 128], strides = [1, 1]} : vector<16x128xf32> to vector<8x128xf32>
    %cst_15 = arith.constant -1.000000e+30 : f32
    %54 = vector.shape_cast %11 : vector<1x136xi1> to vector<1x136xi1>
    %55 = vector.broadcast %54 : vector<1x136xi1> to vector<8x136xi1>
    %56 = vector.broadcast %cst_15 : f32 to vector<8x136xf32>
    %57 = arith.select %55, %1, %56 : vector<8x136xi1>, vector<8x136xf32>
    %58 = vector.extract_strided_slice %57 {offsets = [0, 3], sizes = [8, 128], strides = [1, 1]} : vector<8x136xf32> to vector<8x128xf32>
    %59 = vector.extract_strided_slice %57 {offsets = [0, 4], sizes = [8, 128], strides = [1, 1]} : vector<8x136xf32> to vector<8x128xf32>
    %60 = arith.maximumf %58, %59 : vector<8x128xf32>
    %61 = vector.extract_strided_slice %57 {offsets = [0, 5], sizes = [8, 128], strides = [1, 1]} : vector<8x136xf32> to vector<8x128xf32>
    %62 = arith.maximumf %60, %61 : vector<8x128xf32>
    %c0_16 = arith.constant 0 : index
    %c0_17 = arith.constant 0 : index
    %63 = vector.load %arg4[%c0_16, %c0_17] : memref<8x8xf32, #tpu.memory_space<vmem>>, vector<8x8xf32>
    %cst_18 = arith.constant dense<0.000000e+00> : vector<8x128xf32>
    %64 = tpu.matmul %63, %62, %cst_18 {dimension_numbers = #tpu.dot_dimension_numbers<[1], [0], [0], [1], [0, 0, 1, 1], [], []>} : vector<8x8xf32>, vector<8x128xf32>, vector<8x128xf32> -> vector<8x128xf32>
    %c0_19 = arith.constant 0 : index
    %c0_20 = arith.constant 0 : index
    %c0_21 = arith.constant 0 : index
    %65 = vector.load %arg7[%c0_19, %c0_20, %c0_21] : memref<1x32x128xf32, #tpu.memory_space<vmem>>, vector<1x8x128xf32>
    %66 = vector.shape_cast %65 : vector<1x8x128xf32> to vector<8x128xf32>
    %67 = vector.shape_cast %19 : vector<8x128xf32> to vector<1x8x128xf32>
    tpu.vector_store %arg7[%c0_19, %c0_20, %c0_21], %67 {strides = array<i32>} : memref<1x32x128xf32, #tpu.memory_space<vmem>>, vector<1x8x128xf32>,
    %c0_22 = arith.constant 0 : index
    %c8 = arith.constant 8 : index
    %c0_23 = arith.constant 0 : index
    %68 = vector.load %arg7[%c0_22, %c8, %c0_23] : memref<1x32x128xf32, #tpu.memory_space<vmem>>, vector<1x8x128xf32>
    %69 = vector.shape_cast %68 : vector<1x8x128xf32> to vector<8x128xf32>
    %70 = vector.shape_cast %52 : vector<8x128xf32> to vector<1x8x128xf32>
    tpu.vector_store %arg7[%c0_22, %c8, %c0_23], %70 {strides = array<i32>} : memref<1x32x128xf32, #tpu.memory_space<vmem>>, vector<1x8x128xf32>,
    %c0_24 = arith.constant 0 : index
    %c16 = arith.constant 16 : index
    %c0_25 = arith.constant 0 : index
    %71 = vector.load %arg7[%c0_24, %c16, %c0_25] : memref<1x32x128xf32, #tpu.memory_space<vmem>>, vector<1x8x128xf32>
    %72 = vector.shape_cast %71 : vector<1x8x128xf32> to vector<8x128xf32>
    %73 = vector.shape_cast %53 : vector<8x128xf32> to vector<1x8x128xf32>
    tpu.vector_store %arg7[%c0_24, %c16, %c0_25], %73 {strides = array<i32>} : memref<1x32x128xf32, #tpu.memory_space<vmem>>, vector<1x8x128xf32>,
    %c0_26 = arith.constant 0 : index
    %c24 = arith.constant 24 : index
    %c0_27 = arith.constant 0 : index
    %74 = vector.load %arg7[%c0_26, %c24, %c0_27] : memref<1x32x128xf32, #tpu.memory_space<vmem>>, vector<1x8x128xf32>
    %75 = vector.shape_cast %74 : vector<1x8x128xf32> to vector<8x128xf32>
    %76 = vector.shape_cast %64 : vector<8x128xf32> to vector<1x8x128xf32>
    tpu.vector_store %arg7[%c0_26, %c24, %c0_27], %76 {strides = array<i32>} : memref<1x32x128xf32, #tpu.memory_space<vmem>>, vector<1x8x128xf32>,
    return
  }
  func.func @transform_0(%arg0: i32, %arg1: i32) -> (i32, i32, i32, i32) {
    %c0_i32 = arith.constant 0 : i32
    %c0_i32_0 = arith.constant 0 : i32
    %c0_i32_1 = arith.constant 0 : i32
    return %arg0, %arg1, %c0_i32, %c0_i32_0 : i32, i32, i32, i32
  }
  func.func @transform_1(%arg0: i32, %arg1: i32) -> (i32, i32) {
    %c0_i32 = arith.constant 0 : i32
    %c0_i32_0 = arith.constant 0 : i32
    %c0_i32_1 = arith.constant 0 : i32
    return %c0_i32, %c0_i32_0 : i32, i32
  }
  func.func @transform_2(%arg0: i32, %arg1: i32) -> (i32, i32) {
    %c0_i32 = arith.constant 0 : i32
    %c0_i32_0 = arith.constant 0 : i32
    %c0_i32_1 = arith.constant 0 : i32
    return %c0_i32, %c0_i32_0 : i32, i32
  }
  func.func @transform_3(%arg0: i32, %arg1: i32) -> (i32, i32) {
    %c0_i32 = arith.constant 0 : i32
    %c0_i32_0 = arith.constant 0 : i32
    %c0_i32_1 = arith.constant 0 : i32
    return %c0_i32, %c0_i32_0 : i32, i32
  }
  func.func @transform_4(%arg0: i32, %arg1: i32) -> (i32, i32) {
    %c0_i32 = arith.constant 0 : i32
    %c0_i32_0 = arith.constant 0 : i32
    %c0_i32_1 = arith.constant 0 : i32
    return %c0_i32, %c0_i32_0 : i32, i32
  }
  func.func @transform_5(%arg0: i32, %arg1: i32) -> (i32, i32, i32) {
    %c0_i32 = arith.constant 0 : i32
    %c0_i32_0 = arith.constant 0 : i32
    return %arg0, %c0_i32, %arg1 : i32, i32, i32
  }
}

</mosaic_0001>

<bundles_post_ra>
// kernel: tpu_custom_call.1
= control target key start
LH: loop header
LB: loop body
LE: loop exit
PB: predicated region body
PF: predicated region fallthrough
CT: control target
= control target key end

     0   :  { %10 = vsyncpa [#allocation3], 0  ;;  %s1337_s0 = inlined_call_operand.vmem [shape: f32[2,1,8,136], index: 0, kind: input, shape index: {}]   ;;  %s1338_s1 = inlined_call_operand.vmem [shape: f32[24,8], index: 1, kind: input, shape index: {}]   ;;  %s1339_s2 = inlined_call_operand.vmem [shape: f32[8,8], index: 2, kind: input, shape index: {}]   ;;  %s1340_s3 = inlined_call_operand.hbm [shape: f32[16,112], index: 3, kind: input, shape index: {}]   ;;  %s1341_s4 = inlined_call_operand.vmem [shape: f32[16,1], index: 4, kind: input, shape index: {}]   ;;  %s1342_s5 = inlined_call_operand.hbm [shape: f32[2,32,128], index: 5, kind: output, shape index: {}]  }
   0x1   :  { %11 = vsyncpa [#allocation4], 0 }
   0x2   :  { %13 = vsyncpa [#allocation4 + $0x1], 0  ;;  %s1132_s18 = smov 0   ;;  %s1134_s19 = smov 0  }
   0x3   :  { %s1136_s20 = smov 0   ;;  %s1138_s21 = smov 0  }
   0x4   :  { %s1140_s22 = smov 0   ;;  %s1142_s23 = smov 0  }
   0x5 LB: > { %s740_s24 = sadd.s32 4294967295, %s1086_s23   ;;  %s741_s25 = sadd.s32 4294967294, %s1086_s23   ;;  %s1086_s23 = sphi %s1142_s23, %s19_s23   ;;  %s1082_s22 = sphi %s1140_s22, %s1351_s22   ;;  %s1078_s21 = sphi %s1138_s21, %s1350_s21   ;;  %s1074_s20 = sphi %s1136_s20, %s1349_s20   ;;  %s1070_s19 = sphi %s1134_s19, %s1348_s19   ;;  %s1066_s18 = sphi %s1132_s18, %s1347_s18  }
   0x6   : > { %s31_s26 = sadd.s32 1, %s1082_s22  ;;  %s152_s27 = sadd.s32 1, %s1074_s20 }
   0x7   : > { %p33_p0 = scmp.ge.s32.totalorder %s31_s26, 2  ;;  %p162_p1 = scmp.ne.s32.totalorder %s1074_s20, %s1070_s19 }
   0x8   : > { %p163_p2 = scmp.eq.s32.totalorder %s740_s24, 1  ;;  %p168_p3 = scmp.ne.s32.totalorder %s1070_s19, %s1066_s18 }
   0x9   : > { %s1353_s26 = smov (%p33_p0, %s31_s26), 0  ;;  %p169_p5 = scmp.eq.s32.totalorder %s741_s25, 1 }
   0xa   : > { %p1172_p4 = por %p163_p2, %p162_p1  ;;  %s147_s29 = ssub.s32 %s1082_s22, %s1353_s26 }
   0xb   : > { %p742_p6 = scmp.ge.s32.totalorder %s1086_s23, 1  ;;  %p150_p7 = scmp.eq.s32.totalorder %s147_s29, 0 }
   0xc   : > { %p1179_p8 = por %p169_p5, %p168_p3  ;;  %p176_p9 = scmp.lt.s32.totalorder %s1086_s23, 3 }
   0xd   : > { %s1185_s6 = scalar_select %p150_p7, %s1074_s20, %s152_s27  }
   0xe   : > { %p177_p10 = pnand %p742_p6, %p176_p9  ;;  %p780_p11 = scmp.eq.s32.totalorder %s740_s24, 0 }
   0xf   : > { %s193_s9 = sshll.u32 %s1340_s3, 4  ;;  %s1088_s10 = smov [#allocation2]   ;;  %s194_s9 = int_to_ptr.hbm [resolvable:$true] %s193_s9 }
  0x10   : > { %p772_p12 = pneg %p177_p10  ;;  %s195_s11 = sshll.u32 %s1088_s10, 4  ;;  %s196_s11 = int_to_ptr.vmem [resolvable:$true] %s195_s11 }
  0x11   : > { %s1089_s12 = smov 128   ;;  %s1090_s13 = smov 8  }
  0x12   : > { %p773_p13 = pnand %p780_p11, %p772_p12  ;;  %226 = sbr.rel (%p177_p10) target bundleno = 605 (0x25d), region = 40 }
  0x14   : > { %775 = dma.hbm_to_vmem [thread:$0]  (!%p773_p13), %s194_s9, 256, %s196_s11, [#allocation3], %s1089_s12, %s1089_s12, %s1090_s13  }
  0x17   : > { %1057 = dma.done.wait (%p780_p11), [#allocation3], 256  }
  0x18   : > { %1059 = vsyncadd (%p780_p11), [#allocation3], 4294967040  ;;  %p259_p0 = scmp.lt.s32.totalorder %s1078_s21, 1  ;;  %vm287_vm0 = vcmask 64512   ;;  %v284_v1 = vld [vmem:[%s1338_s1] sm:$0xff]  ;;  %v285_v2 = vld [vmem:[%s1338_s1 + $0x8] sm:$0xff]  ;;  %v272_v5 = vlaneseq }
  0x19   : > { %v286_v3 = vld [vmem:[%s1338_s1 + $0x10] sm:$0xff]  ;;  %s1091_s10 = smov 126   ;;  %s1092_s11 = smov 124   ;;  %vm399_vm6 = vcmask 1014784   ;;  %vm441_vm7 = vcmask 998400   ;;  %vm381_vm8 = vcmask 1039360  }
  0x1a   : > { %s260_s14 = scalar_select %p259_p0, %s1078_s21, 1  ;;  %v273_v6 = vand.u32 127, %v272_v5  ;;  %vm393_vm9 = vcmask 1022976   ;;  %vm435_vm10 = vcmask 1006592   ;;  %v1099_v47 = vmov 0  }
  0x1b   : > { %s1093_s12 = smov 122   ;;  %s1094_s13 = smov 127   ;;  %973 = vset.pattern.permute.xlu1 %v1099_v47  ;;  %972 = vset.pattern.permute.xlu0 %v1099_v47  ;;  %vm387_vm11 = vcmask 1031168   ;;  %vm409_vm12 = vcmask 7168   ;;  %vm528_vm15 = vcmask 916480  }
  0x1c   : > { %s764_s15 = sshll.u32 %s260_s14, 4  ;;  %v276_v8 = vadd.s32 4294967292, %v273_v6  ;;  %s1095_s14 = smov 125  }
  0x1d   : > { %s1195_s24 = scalar_lea.vmem %s1337_s0, %s764_s15  ;;  %s1096_s15 = smov 123  }
  0x1e   : > { %v268_v0 = vld [vmem:[%s1195_s24] sm:$0xff]  ;;  %vm278_vm1 = vcmp.ge.s32.totalorder %v276_v8, 0  ;;  %vm280_vm2 = vcmp.lt.s32.totalorder %v276_v8, 16  ;;  %v269_v15 = vld [vmem:[%s1195_s24 + $0x8] sm:$0xff]  ;;  %s1097_s16 = smov 2   ;;  %s1098_s17 = smov 1  }
  0x1f   : > { %312 = vmatpush.msra.mxu0 %v268_v0  ;;  %vm1212_vm4 = vmand %vm278_vm1, %vm280_vm2  ;;  %338 = vmatpush.msra.mxu1 %v269_v15  ;;  %s256_s9 = sand.u32 1, %s1070_s19   ;;  %s1024_s7 = scalar_lea.hbm %s1342_s5, 64 }
  0x20   : > { %750 = vmatmul.msk.f32.vlgmr.msra.gmra.mxu0 %vm287_vm0, %v284_v1  ;;  %753 = vmatmul.msk.f32.vlgmr.msra.gmra.mxu1 %vm287_vm0, %v284_v1  ;;  %v1232_v20 = vsel %vm1212_vm4, %v268_v0, -1e+30  ;;  %s631_s24 = scalar_lea.sflag [#allocation4], %s256_s9 }
  0x21   : > { %v907_v21 = vpack.i.bf16 -1e+30, %v1232_v20 }
  0x28   : > { %751 = vmatmul.msk.f32.gmra.mxu0 %vm287_vm0, %v285_v2  ;;  %754 = vmatmul.msk.f32.gmra.mxu1 %vm287_vm0, %v285_v2 }
  0x30   : > { %752 = vmatmul.msk.f32.gmra.mxu0 %vm287_vm0, %v286_v3  ;;  %755 = vmatmul.msk.f32.gmra.mxu1 %vm287_vm0, %v286_v3 }
  0x9d   : > { %v1210_v4 = vpop.f32.mrf.mxu0  ;;  %v340_v51 = vpop.f32.mrf.mxu1 }
  0x9e   : > { %vm349_vm13 = vcmp.gt.f32.partialorder %v1210_v4, 0.0  ;;  %vm350_vm14 = vcmp.gt.f32.partialorder %v340_v51, 0.0 }
  0xa5   : > { %v317_v7 = vpop.f32.mrf.mxu0  ;;  %v343_v63 = vpop.f32.mrf.mxu1 }
  0xa6   : > { %v357_v16 = vmul.f32 0.3, %v317_v7  ;;  %vm351_vm5 = vcmp.gt.f32.partialorder %v317_v7, 0.0 }
  0xa8   : > { %v363_v17 = vsel %vm351_vm5, %v317_v7, %v357_v16 }
  0xa9   : > { %v371_v18 = vsel %vm1212_vm4, %v363_v17, 0.0 }
  0xaa   : > { %v867_v19 = vpack.i.bf16 0.0, %v371_v18 }
  0xad   : > { %v320_v9 = vpop.f32.mrf.mxu0 }
  0xae   : > { %vm353_vm3 = vcmp.gt.f32.partialorder %v320_v9, 0.0  ;;  %v359_v10 = vmul.f32 0.3, %v320_v9 }
  0xb0   : > { %v365_v12 = vsel %vm353_vm3, %v320_v9, %v359_v10 }
  0xb1   : > { %v373_v13 = vsel %vm1212_vm4, %v365_v12, 0.0 }
  0xb2   : > { %v872_v14 = vpack.i.bf16 0.0, %v373_v13 }
  0xb4   : > { %873 = vrot.lane.b32.xlu2 %v872_v14, %s1091_s10  ;;  %858 = vrot.lane.b32.xlu1 %v872_v14, %s1092_s11 }
  0xb5   : > { %848 = vrot.lane.b32.xlu0 %v872_v14, %s1093_s12  ;;  %s765_s12 = sshll.u32 %s1078_s21, 5 }
  0xbc   : > { %878 = vrot.lane.b32.xlu2 %v872_v14, %s1094_s13  ;;  %863 = vrot.lane.b32.xlu1 %v872_v14, %s1095_s14 }
  0xbd   : > { %853 = vrot.lane.b32.xlu0 %v872_v14, %s1096_s15  ;;  %s643_s15 = scalar_lea.hbm %s1342_s5, %s765_s12 }
  0xc4   : > { %402 = vrot.lane.b32.xlu2 %v373_v13, %s1097_s16  ;;  %868 = vrot.lane.b32.xlu1 %v867_v19, %s1092_s11 }
  0xc5   : > { %883 = vrot.lane.b32.xlu0 %v872_v14, %s1098_s17  ;;  %v346_v14 = vpop.f32.mrf.mxu1  ;;  %s646_s17 = sshll.u32 %s643_s15, 4  ;;  %s647_s17 = int_to_ptr.hbm [resolvable:$true] %s646_s17 }
  0xc6   : > { %s1018_s21 = sshra.s32 %s647_s17, 4  ;;  %s1019_s21 = int_to_ptr.hbm [resolvable:$true] %s1018_s21 }
  0xc7   : > { %s1020_s25 = scalar_lea.hbm %s1019_s21, 32  ;;  %p1025_p5 = scmp.lt.s32.totalorder %s1019_s21, %s1342_s5 }
  0xc8   : > { %p1021_p1 = scmp.ne.s32.totalorder %s1019_s21, %s1020_s25  ;;  %p1026_p6 = scmp.lt.s32.totalorder %s1024_s7, %s1020_s25 }
  0xca   : > { %p1022_p2 = pnand %p1021_p1, %p1172_p4  ;;  %p1027_p7 = por %p1026_p6, %p1025_p5 }
  0xcc   : > { %898 = vrot.lane.b32.xlu2 %v867_v19, %s1094_s13  ;;  %893 = vrot.lane.b32.xlu1 %v867_v19, %s1091_s10  ;;  %p1023_p3 = pneg %p1022_p2 }
  0xcd   : > { %888 = vrot.lane.b32.xlu0 %v867_v19, %s1095_s14 }
  0xce   : > { %p1028_p9 = pnand %p1027_p7, %p1023_p3 }
  0xd4   : > { %908 = vrot.lane.b32.xlu1 %v907_v21, %s1091_s10 }
  0xd5   : > { %903 = vrot.lane.b32.xlu0 %v907_v21, %s1094_s13 }
 0x10e   : > { %v874_v22 = vpop.permute.xlu2 %873 }
 0x10f   : > { %v876_v49 = vunpack.i.h.bf16 %v874_v22  ;;  %v875_v50 = vunpack.i.l.bf16 %v874_v22 }
 0x111   : > { %v1245_v54 = vsel %vm387_vm11, %v875_v50, %v876_v49 }
 0x112   : > { %v932_v59 = vpack.i.bf16 %v876_v49, %v1245_v54 }
 0x116   : > { %v879_v27 = vpop.permute.xlu2 %878 }
 0x117   : > { %v881_v33 = vunpack.i.h.bf16 %v879_v27  ;;  %v880_v34 = vunpack.i.l.bf16 %v879_v27 }
 0x119   : > { %v415_v37 = vsel %vm381_vm8, %v880_v34, %v881_v33  ;;  %v355_v34 = vmul.f32 0.3, %v1210_v4 }
 0x11a   : > { %v942_v44 = vpack.i.bf16 %v881_v33, %v415_v37  ;;  %v446_v33 = vld [vmem:[%s1341_s4 + $0x8] sm:$0xff] }
 0x11e   : > { %v403_v57 = vpop.permute.xlu2 %402 }
 0x126   : > { %v859_v23 = vpop.permute.xlu1 %858  ;;  %v899_v11 = vpop.permute.xlu2 %898 }
 0x127   : > { %v861_v24 = vunpack.i.h.bf16 %v859_v23  ;;  %v860_v25 = vunpack.i.l.bf16 %v859_v23  ;;  %v849_v26 = vpop.permute.xlu0 %848  ;;  %v901_v15 = vunpack.i.h.bf16 %v899_v11  ;;  %v900_v16 = vunpack.i.l.bf16 %v899_v11 }
 0x128   : > { %v851_v28 = vunpack.i.h.bf16 %v849_v26  ;;  %v850_v29 = vunpack.i.l.bf16 %v849_v26 }
 0x129   : > { %v430_v30 = vsel %vm399_vm6, %v860_v25, %v861_v24 }
 0x12a   : > { %v922_v31 = vpack.i.bf16 %v861_v24, %v430_v30  ;;  %v442_v32 = vsel %vm441_vm7, %v850_v29, %v851_v28  ;;  %v382_v24 = vsel %vm381_vm8, %v900_v16, %v901_v15 }
 0x12b   : > { %v912_v35 = vpack.i.bf16 %v851_v28, %v442_v32 }
 0x12c   : > { %923 = vrot.lane.b32.xlu1 %v922_v31, %s1091_s10 }
 0x12d   : > { %913 = vrot.lane.b32.xlu2 %v912_v35, %s1091_s10  ;;  %v356_v35 = vmul.f32 0.3, %v340_v51 }
 0x12e   : > { %v864_v36 = vpop.permute.xlu1 %863 }
 0x12f   : > { %v866_v38 = vunpack.i.h.bf16 %v864_v36  ;;  %v865_v39 = vunpack.i.l.bf16 %v864_v36  ;;  %v854_v40 = vpop.permute.xlu0 %853  ;;  %v362_v36 = vsel %vm350_vm14, %v340_v51, %v356_v35 }
 0x130   : > { %v856_v41 = vunpack.i.h.bf16 %v854_v40  ;;  %v855_v42 = vunpack.i.l.bf16 %v854_v40 }
 0x131   : > { %v425_v43 = vsel %vm393_vm9, %v865_v39, %v866_v38 }
 0x132   : > { %v927_v45 = vpack.i.bf16 %v866_v38, %v425_v43  ;;  %v436_v46 = vsel %vm435_vm10, %v855_v42, %v856_v41 }
 0x133   : > { %v917_v48 = vpack.i.bf16 %v856_v41, %v436_v46 }
 0x134   : > { %943 = vrot.lane.b32.xlu1 %v942_v44, %s1091_s10 }
 0x135   : > { %918 = vrot.lane.b32.xlu0 %v917_v48, %s1091_s10  ;;  %928 = vrot.lane.b32.xlu2 %v927_v45, %s1091_s10 }
 0x136   : > { %v869_v52 = vpop.permute.xlu1 %868 }
 0x137   : > { %v884_v53 = vpop.permute.xlu0 %883  ;;  %v871_v61 = vunpack.i.h.bf16 %v869_v52  ;;  %v870_v62 = vunpack.i.l.bf16 %v869_v52 }
 0x138   : > { %v886_v55 = vunpack.i.h.bf16 %v884_v53  ;;  %v885_v56 = vunpack.i.l.bf16 %v884_v53 }
 0x139   : > { %v400_v7 = vsel %vm399_vm6, %v870_v62, %v871_v61 }
 0x13a   : > { %v410_v58 = vsel %vm409_vm12, %v885_v56, %v886_v55  ;;  %v937_v13 = vpack.i.bf16 %v400_v7, %v403_v57 }
 0x13b   : > { %v952_v60 = vpack.i.bf16 %v410_v58, %v885_v56 }
 0x13d   : > { %933 = vrot.lane.b32.xlu0 %v932_v59, %s1091_s10  ;;  %953 = vrot.lane.b32.xlu2 %v952_v60, %s1091_s10 }
 0x13e   : > { %v894_v0 = vpop.permute.xlu1 %893 }
 0x13f   : > { %v896_v1 = vunpack.i.h.bf16 %v894_v0  ;;  %v895_v2 = vunpack.i.l.bf16 %v894_v0  ;;  %v889_v3 = vpop.permute.xlu0 %888 }
 0x140   : > { %v891_v5 = vunpack.i.h.bf16 %v889_v3  ;;  %v890_v6 = vunpack.i.l.bf16 %v889_v3 }
 0x141   : > { %v1252_v8 = vsel %vm387_vm11, %v895_v2, %v896_v1  ;;  %v962_v28 = vpack.i.bf16 %v382_v24, %v896_v1  ;;  %v586_v1 = vld [vmem:[%s1339_s2] sm:$0xff] }
 0x142   : > { %v957_v9 = vpack.i.bf16 %v1252_v8, %v891_v5  ;;  %v394_v10 = vsel %vm393_vm9, %v890_v6, %v891_v5  ;;  %v445_v2 = vld [vmem:[%s1341_s4] sm:$0xff] }
 0x143   : > { %v947_v12 = vpack.i.bf16 %v394_v10, %v871_v61 }
 0x145   : > { %948 = vrot.lane.b32.xlu1 %v947_v12, %s1091_s10  ;;  %938 = vrot.lane.b32.xlu0 %v937_v13, %s1091_s10 }
 0x146   : > { %958 = vrot.lane.b32.xlu2 %v957_v9, %s1091_s10  ;;  %v909_v17 = vpop.permute.xlu1 %908 }
 0x147   : > { %v904_v18 = vpop.permute.xlu0 %903  ;;  %v911_v19 = vunpack.i.h.bf16 %v909_v17  ;;  %v910_v21 = vunpack.i.l.bf16 %v909_v17 }
 0x148   : > { %v906_v22 = vunpack.i.h.bf16 %v904_v18  ;;  %v905_v23 = vunpack.i.l.bf16 %v904_v18 }
 0x149   : > { %v581_v27 = vsel %vm387_vm11, %v910_v21, %v911_v19 }
 0x14a   : > { %v576_v25 = vmax.f32 %v906_v22, -1e+30  ;;  %v572_v26 = vsel %vm381_vm8, %v905_v23, %v906_v22 }
 0x14b   : > { %v575_v29 = vmax.f32 %v1232_v20, %v572_v26  ;;  %v361_v20 = vsel %vm349_vm13, %v1210_v4, %v355_v34  ;;  %v443_v26 = vld [vmem:[#allocation2] sm:$0xff] }
 0x14c   : > { %v585_v30 = vmax.f32 %v576_v25, %v911_v19 }
 0x14d   : > { %459 = vrot.lane.b32.xlu1 %v901_v15, %s1091_s10  ;;  %963 = vrot.lane.b32.xlu0 %v962_v28, %s1091_s10  ;;  %v584_v31 = vmax.f32 %v575_v29, %v581_v27  ;;  %s747_s10 = sshll.u32 %s256_s9, 5  ;;  %v444_v28 = vld [vmem:[#allocation2 + $0x8] sm:$0xff] }
 0x14f   : > { %v967_v32 = vpack.i.bf16 %v585_v30, %v584_v31 }
 0x151   : > { %968 = vrot.lane.b32.xlu2 %v967_v32, %s1095_s14 }
 0x155   : > { %454 = vperm.xlu1 %973, %v446_v33   ;;  %449 = vperm.xlu0 %972, %v445_v2  }
 0x159   : > { %620 = vrot.lane.b32.xlu2 %v361_v20, %s1092_s11 }
 0x15d   : > { %622 = vrot.lane.b32.xlu1 %v362_v36, %s1092_s11  ;;  %s258_s11 = scalar_lea.vmem [#allocation5], %s747_s10 }
 0x15e   : > { %s644_s16 = sshll.u32 %s258_s11, 4  ;;  %s645_s16 = int_to_ptr.vmem [resolvable:$true] %s644_s16 }
 0x187   : > { %v914_v37 = vpop.permute.xlu2 %913 }
 0x188   : > { %v916_v38 = vunpack.i.h.bf16 %v914_v37  ;;  %v915_v39 = vunpack.i.l.bf16 %v914_v37 }
 0x18a   : > { %v513_v40 = vsel %vm387_vm11, %v915_v39, %v916_v38 }
 0x18b   : > { %537 = vmatpush.msra.mxu2 %v513_v40 }
 0x18f   : > { %v929_v41 = vpop.permute.xlu2 %928 }
 0x190   : > { %v931_v49 = vunpack.i.h.bf16 %v929_v41  ;;  %v930_v50 = vunpack.i.l.bf16 %v929_v41 }
 0x192   : > { %v510_v58 = vsel %vm387_vm11, %v930_v50, %v931_v49 }
 0x197   : > { %v954_v42 = vpop.permute.xlu2 %953 }
 0x198   : > { %v956_v5 = vunpack.i.h.bf16 %v954_v42  ;;  %v955_v6 = vunpack.i.l.bf16 %v954_v42 }
 0x19a   : > { %v507_v13 = vsel %vm387_vm11, %v955_v6, %v956_v5 }
 0x19e   : > { %v924_v43 = vpop.permute.xlu1 %923 }
 0x19f   : > { %v926_v46 = vunpack.i.h.bf16 %v924_v43  ;;  %v925_v47 = vunpack.i.l.bf16 %v924_v43 }
 0x1a0   : > { %v959_v44 = vpop.permute.xlu2 %958 }
 0x1a1   : > { %v511_v53 = vsel %vm387_vm11, %v925_v47, %v926_v46  ;;  %v960_v16 = vunpack.i.l.bf16 %v959_v44 }
 0x1a6   : > { %v944_v55 = vpop.permute.xlu1 %943 }
 0x1a7   : > { %v919_v45 = vpop.permute.xlu0 %918  ;;  %v946_v60 = vunpack.i.h.bf16 %v944_v55  ;;  %v945_v61 = vunpack.i.l.bf16 %v944_v55 }
 0x1a8   : > { %v921_v48 = vunpack.i.h.bf16 %v919_v45  ;;  %v920_v4 = vunpack.i.l.bf16 %v919_v45 }
 0x1a9   : > { %v508_v7 = vsel %vm387_vm11, %v945_v61, %v946_v60 }
 0x1aa   : > { %v512_v51 = vsel %vm387_vm11, %v920_v4, %v921_v48 }
 0x1ab   : > { %538 = vmatpush.msra.mxu2 %v512_v51  ;;  %v969_v52 = vpop.permute.xlu2 %968 }
 0x1ac   : > { %v971_v56 = vunpack.i.h.bf16 %v969_v52  ;;  %v970_v57 = vunpack.i.l.bf16 %v969_v52 }
 0x1ad   : > { %539 = vmatpush.msra.mxu2 %v511_v53 }
 0x1ae   : > { %v593_v0 = vsel %vm393_vm9, %v970_v57, %v971_v56 }
 0x1af   : > { %v934_v59 = vpop.permute.xlu0 %933  ;;  %540 = vmatpush.msra.mxu2 %v510_v58  ;;  %613 = vmatpush.msra.mxu3 %v593_v0 }
 0x1b0   : > { %v936_v62 = vunpack.i.h.bf16 %v934_v59  ;;  %v935_v63 = vunpack.i.l.bf16 %v934_v59  ;;  %758 = vmatmul.msk.f32.vlgmr.msra.gmra.mxu3 %vm287_vm0, %v586_v1 }
 0x1b2   : > { %v509_v3 = vsel %vm387_vm11, %v935_v63, %v936_v62 }
 0x1b3   : > { %541 = vmatpush.msra.mxu2 %v509_v3  ;;  %v621_v29 = vpop.permute.xlu2 %620 }
 0x1b5   : > { %542 = vmatpush.msra.mxu2 %v508_v7 }
 0x1b7   : > { %v949_v9 = vpop.permute.xlu1 %948  ;;  %v939_v10 = vpop.permute.xlu0 %938  ;;  %543 = vmatpush.msra.mxu2 %v1245_v54  ;;  %v961_v54 = vunpack.i.h.bf16 %v959_v44 }
 0x1b8   : > { %v950_v11 = vunpack.i.l.bf16 %v949_v9  ;;  %v941_v12 = vunpack.i.h.bf16 %v939_v10  ;;  %v940_v14 = vunpack.i.l.bf16 %v939_v10  ;;  %v951_v15 = vunpack.i.h.bf16 %v949_v9 }
 0x1b9   : > { %544 = vmatpush.msra.mxu2 %v507_v13 }
 0x1ba   : > { %v506_v17 = vsel %vm387_vm11, %v941_v12, %v950_v11  ;;  %v505_v18 = vsel %vm387_vm11, %v951_v15, %v960_v16 }
 0x1bb   : > { %545 = vmatpush.msra.mxu2 %v940_v14 }
 0x1bd   : > { %546 = vmatpush.msra.mxu2 %v506_v17 }
 0x1bf   : > { %v460_v19 = vpop.permute.xlu1 %459  ;;  %v964_v21 = vpop.permute.xlu0 %963  ;;  %547 = vmatpush.msra.mxu2 %v505_v18 }
 0x1c0   : > { %v966_v22 = vunpack.i.h.bf16 %v964_v21  ;;  %v965_v23 = vunpack.i.l.bf16 %v964_v21 }
 0x1c2   : > { %v504_v24 = vsel %vm387_vm11, %v961_v54, %v965_v23  ;;  %v503_v25 = vsel %vm387_vm11, %v966_v22, %v460_v19 }
 0x1c3   : > { %548 = vmatpush.msra.mxu2 %v504_v24 }
 0x1c5   : > { %549 = vmatpush.msra.mxu2 %v503_v25 }
 0x1c7   : > { %v455_v27 = vpop.permute.xlu1 %454  ;;  %550 = vmatpush.msra.mxu2 %v1252_v8  ;;  %v450_v33 = vpop.permute.xlu0 %449 }
 0x1c8   : > { %756 = vmatmul.msk.f32.vlgmr.msra.gmra.mxu2 %vm528_vm15, %v443_v26 }
 0x1cf   : > { %v623_v30 = vpop.permute.xlu1 %622 }
 0x1d0   : > { %v624_v31 = vsel %vm399_vm6, %v621_v29, %v623_v30  ;;  %757 = vmatmul.msk.f32.gmra.mxu2 %vm528_vm15, %v444_v28 }
 0x1d1   : > { %626 = vst [vmem:[%s258_s11] sm:$0xff] %v624_v31 }
 0x233   : > { %v615_v32 = vpop.f32.mrf.mxu3 }
 0x234   : > { %629 = vst [vmem:[%s258_s11 + $0x18] sm:$0xff] %v615_v32 }
 0x24b   : > { %v552_v34 = vpop.f32.mrf.mxu2 }
 0x24c   : > { %v553_v35 = vadd.f32 %v552_v34, %v450_v33 }
 0x24e   : > { %vm558_vm0 = vcmp.gt.f32.partialorder %v553_v35, 0.0  ;;  %v560_v8 = vmul.f32 0.3, %v553_v35 }
 0x250   : > { %v562_v20 = vsel %vm558_vm0, %v553_v35, %v560_v8 }
 0x251   : > { %627 = vst [vmem:[%s258_s11 + $0x8] sm:$0xff] %v562_v20 }
 0x253   : > { %v555_v36 = vpop.f32.mrf.mxu2 }
 0x254   : > { %v556_v37 = vadd.f32 %v555_v36, %v455_v27 }
 0x256   : > { %vm559_vm1 = vcmp.gt.f32.partialorder %v556_v37, 0.0  ;;  %v561_v38 = vmul.f32 0.3, %v556_v37 }
 0x258   : > { %v563_v39 = vsel %vm559_vm1, %v556_v37, %v561_v38 }
 0x259   : > { %628 = vst [vmem:[%s258_s11 + $0x10] sm:$0xff] %v563_v39 }
 0x25a   : > { %1031 = shalt.err (!%p1028_p9)
}
 0x25b   : > { %s1100_s9 = smov 128   ;;  %s1101_s11 = smov 8  }
 0x25c   : > { %770 = dma.vmem_to_hbm [thread:$0]  (%p1172_p4), %s645_s16, 512, %s647_s17, %s631_s24, %s1100_s9, %s1100_s9, %s1101_s11  }
 0x25d PF: > { %p782_p10 = scmp.ge.s32.totalorder %s1086_s23, 2  ;;  %s661_s12 = sand.u32 1, %s1066_s18  }
 0x25e   : > { %s662_s13 = scalar_lea.sflag [#allocation4], %s661_s12 }
 0x25f   : > { %p777_p11 = pnand %p782_p10, %p1179_p8 }
 0x261   : > { %p778_p12 = pneg %p777_p11 }
 0x263   : > { %1061 = dma.done.wait (%p778_p12), %s662_s13, 512  }
 0x264   : > { %1063 = vsyncadd (%p778_p12), %s662_s13, 4294966784  ;;  %s19_s23 = sadd.s32 1, %s1086_s23   ;;  %s1347_s18 = smov %s1070_s19 }
 0x265   : > { %p16_p13 = scmp.ge.s32.totalorder %s19_s23, 4   ;;  %s1348_s19 = smov %s1074_s20 }
 0x266   : > { %s1349_s20 = smov %s1185_s6  ;;  %s1350_s21 = smov %s1082_s22 }
 0x267   : > { %s1351_s22 = smov %s1353_s26  ;;  %18 = sbr.rel (!%p16_p13) target bundleno = 5 (0x5), region = 80 }
 0x26c   :  { %668 = vsyncpa [#allocation3], 1 }
 0x26d   :  { %670 = vsyncpa [#allocation3 + $0x1], 1 }
 0x26e   :  { %671 = vsyncpa [#allocation4], 1 }
 0x26f   :  { %673 = vsyncpa [#allocation4 + $0x1], 1 }

</bundles_post_ra>
